<compile_context>
chip_gen: v7x
topology: tpu7x:2x2x1
jax: 0.10.0
libtpu: 0.0.40
codegen_flags: <defaults>
</compile_context>

<pallas_src>
import functools

import jax
import jax.numpy as jnp
from jax.experimental import pallas as pl
from jax.experimental.pallas import tpu as pltpu


def _policy_head_kernel(x_ref, wc_ref, shift_ref, wl_ref, bl_ref, out_ref,
                        *, c_in, p):
    """One batch-block per grid step.

    x_ref    : (BN, C*P) VMEM  flat NCHW activations; channel c is the free
                               lane-aligned view x_ref[:, c*P:(c+1)*P]
    wc_ref   : (2, C)    SMEM  1x1-conv weight with BN scale folded in
    shift_ref: (2,)      SMEM  folded BN shift (beta - mean * scale)
    wl_ref   : (2P, KP)  VMEM  linear weight, class dim zero-padded to KP lanes
    bl_ref   : (1, KP)   VMEM  linear bias, pad lanes = -1e30
    out_ref  : (BN, KP)  VMEM  softmax probabilities (pad lanes -> exactly 0)
    """
    # 1x1 conv + folded BN + ReLU on the VPU. Contraction depth is only C (=4),
    # so broadcast multiply-adds beat an MXU push/pop and each output channel
    # lands directly as a (BN, P) slab in NCHW flatten order.
    chans = []
    for d in range(2):
        acc = x_ref[:, 0:p] * wc_ref[d, 0]
        for c in range(1, c_in):
            acc = acc + x_ref[:, c * p:(c + 1) * p] * wc_ref[d, c]
        chans.append(jnp.maximum(acc + shift_ref[d], 0.0))

    # Linear layer as two accumulating MXU dots (no lane concat / extra copy).
    # Sublane offset P is 8-aligned, so the wl slices are free views.
    y = jnp.dot(chans[0], wl_ref[0:p, :], preferred_element_type=jnp.float32)
    y = y + jnp.dot(chans[1], wl_ref[p:2 * p, :],
                    preferred_element_type=jnp.float32)
    y = y + bl_ref[...]                                        # (BN, KP)

    # Softmax over the lane-dense (padded) class axis. Pad lanes carry a huge
    # negative bias so exp(...) underflows to exactly 0 and they drop out of
    # the max and the sum.
    m = jnp.max(y, axis=-1, keepdims=True)
    e = jnp.exp(y - m)
    denom = jnp.sum(e, axis=-1, keepdims=True)
    inv = pl.reciprocal(denom, approx=True)                    # EUP slot
    inv = inv * (2.0 - denom * inv)                            # Newton -> f32-exact
    out_ref[...] = e * inv                                     # one unmasked full-block store


def policy_head(x, conv_w, bn_gamma, bn_beta, bn_mean, bn_var,
                lin_w, lin_b, eps=1e-5):
    """x: (N, C, H, W) float32 (NCHW, matching the PyTorch module)."""
    n, c, h, w = x.shape
    p = h * w
    cp = c * p
    k = lin_w.shape[0]
    kp = ((k + 127) // 128) * 128                              # lane-dense class dim

    # Fold eval-mode BN into the conv: scale into the weight, shift as a
    # per-channel scalar bias applied before the ReLU.
    scale = bn_gamma / jnp.sqrt(bn_var + eps)
    wc = (conv_w.reshape(2, c) * scale[:, None]).astype(jnp.float32)   # (2, C)
    shift = (bn_beta - bn_mean * scale).astype(jnp.float32)            # (2,)

    # Free reshape of contiguous NCHW -> (N, C*P). No transpose, no pad: the
    # kernel slices channels lane-aligned, and a partial tail batch block is
    # handled by the grid (out-of-range rows are don't-care, never returned).
    x_flat = x.reshape(n, cp).astype(jnp.float32)

    # Linear weight as (2P, KP): wl[d*P + s, j] = W_torch[j, d*P + s], classes
    # zero-padded; padded bias lanes get -1e30 so softmax maps them to 0.
    wl = jnp.zeros((2 * p, kp), jnp.float32).at[:, :k].set(lin_w.T.astype(jnp.float32))
    bl = jnp.full((1, kp), -1e30, jnp.float32).at[0, :k].set(lin_b.astype(jnp.float32))

    # Batch blocking: big blocks (compute is tiny, the kernel is DMA/step-
    # overhead bound), but >= 2 grid steps when N >= 16 so the parallel batch
    # axis can shard across both TensorCores on v7x.
    if n < 16:
        block_n = n                                            # single step; block == full dim
    else:
        block_n = min(512, ((pl.cdiv(n, 2) + 7) // 8) * 8)     # 8-aligned, >= 2 steps
    grid_n = pl.cdiv(n, block_n)

    cost = pl.CostEstimate(
        flops=2 * n * (2 * p) * kp + 4 * n * c * p,            # matmul + conv FMAs
        transcendentals=n * kp + n,                            # exp + reciprocal
        bytes_accessed=n * cp * 4 + 2 * p * kp * 4 + kp * 4 + n * kp * 4,
    )

    out = pl.pallas_call(
        functools.partial(_policy_head_kernel, c_in=c, p=p),
        out_shape=jax.ShapeDtypeStruct((n, kp), jnp.float32),
        grid=(grid_n,),
        in_specs=[
            pl.BlockSpec((block_n, cp), lambda i: (i, 0)),               # x (VMEM)
            pl.BlockSpec(memory_space=pltpu.MemorySpace.SMEM),           # conv weight (scalars)
            pl.BlockSpec(memory_space=pltpu.MemorySpace.SMEM),           # BN shift (scalars)
            pl.BlockSpec((2 * p, kp), lambda i: (0, 0)),                 # linear weight
            pl.BlockSpec((1, kp), lambda i: (0, 0)),                     # linear bias
        ],
        out_specs=pl.BlockSpec((block_n, kp), lambda i: (i, 0)),
        compiler_params=pltpu.CompilerParams(
            dimension_semantics=("parallel",)),
        cost_estimate=cost,
    )(x_flat, wc, shift, wl, bl)
    return out[:, :k]


def policy_head_ref(x, conv_w, bn_gamma, bn_beta, bn_mean, bn_var,
                    lin_w, lin_b, eps=1e-5):
    """Pure-JAX reference mirroring the PyTorch forward (eval-mode BN)."""
    o = jnp.einsum('nchw,dc->ndhw', x, conv_w[:, :, 0, 0])
    o = (o - bn_mean[None, :, None, None]) / jnp.sqrt(bn_var + eps)[None, :, None, None]
    o = o * bn_gamma[None, :, None, None] + bn_beta[None, :, None, None]
    o = jnp.maximum(o, 0.0)
    flat = o.reshape(o.shape[0], -1)
    y = flat @ lin_w.T + lin_b
    return jax.nn.softmax(y, axis=1)


if __name__ == "__main__":
    # Small deterministic problem: CFG.num_filters=4, board 16x16, 10 classes.
    N, C, H, W = 2, 4, 16, 16
    NUM_CLASSES = 10

    key = jax.random.PRNGKey(0)
    ks = jax.random.split(key, 8)
    x = jax.random.normal(ks[0], (N, C, H, W), dtype=jnp.float32)
    conv_w = jax.random.normal(ks[1], (2, C, 1, 1), dtype=jnp.float32) * 0.1
    bn_gamma = 1.0 + 0.1 * jax.random.normal(ks[2], (2,), dtype=jnp.float32)
    bn_beta = 0.1 * jax.random.normal(ks[3], (2,), dtype=jnp.float32)
    bn_mean = 0.1 * jax.random.normal(ks[4], (2,), dtype=jnp.float32)
    bn_var = 1.0 + 0.1 * jax.random.uniform(ks[5], (2,), dtype=jnp.float32)
    lin_w = jax.random.normal(ks[6], (NUM_CLASSES, 2 * H * W), dtype=jnp.float32) * 0.05
    lin_b = 0.1 * jax.random.normal(ks[7], (NUM_CLASSES,), dtype=jnp.float32)

    out = policy_head(x, conv_w, bn_gamma, bn_beta, bn_mean, bn_var, lin_w, lin_b)
    out = jax.block_until_ready(out)

    ref = policy_head_ref(x, conv_w, bn_gamma, bn_beta, bn_mean, bn_var, lin_w, lin_b)
    assert out.shape == (N, NUM_CLASSES)
    assert jnp.allclose(out, ref, atol=1e-5, rtol=1e-5), "mismatch vs reference"
    assert jnp.allclose(jnp.sum(out, axis=1), 1.0, atol=1e-5), "softmax rows must sum to 1"

    print("KERNEL_OK")
</pallas_src>

<mosaic_0001>
module attributes {stable_mosaic.version = 11 : i64} {
  func.func @_policy_head_kernel(%arg0: i32, %arg1: memref<2x1024xf32, #tpu.memory_space<vmem>>, %arg2: memref<2x4xf32, #tpu.memory_space<smem>>, %arg3: memref<2xf32, #tpu.memory_space<smem>>, %arg4: memref<512x128xf32, #tpu.memory_space<vmem>>, %arg5: memref<1x128xf32, #tpu.memory_space<vmem>>, %arg6: memref<2x128xf32, #tpu.memory_space<vmem>>) attributes {dimension_semantics = [#tpu.dimension_semantics<parallel>], iteration_bounds = array<i64: 1>, scalar_prefetch = 0 : i64, scratch_operands = 0 : i64, tpu.core_type = #tpu.core_type<tc>, window_params = [{transform_indices = @transform_0, window_bounds = array<i64: 2, 1024>}, {transform_indices = @transform_1, window_bounds = array<i64: 2, 4>}, {transform_indices = @transform_2, window_bounds = array<i64: 2>}, {pipeline_mode = #tpu.pipeline_mode<synchronous>, transform_indices = @transform_3, window_bounds = array<i64: 512, 128>}, {pipeline_mode = #tpu.pipeline_mode<synchronous>, transform_indices = @transform_4, window_bounds = array<i64: 1, 128>}, {transform_indices = @transform_5, window_bounds = array<i64: 2, 128>}]} {
    %c0 = arith.constant 0 : index
    %c0_0 = arith.constant 0 : index
    %0 = vector.load %arg1[%c0, %c0_0] : memref<2x1024xf32, #tpu.memory_space<vmem>>, vector<2x256xf32>
    %c0_1 = arith.constant 0 : index
    %c0_2 = arith.constant 0 : index
    %1 = memref.load %arg2[%c0_1, %c0_2] : memref<2x4xf32, #tpu.memory_space<smem>>
    %2 = vector.broadcast %1 : f32 to vector<2x256xf32>
    %3 = arith.mulf %0, %2 : vector<2x256xf32>
    %c0_3 = arith.constant 0 : index
    %c256 = arith.constant 256 : index
    %4 = vector.load %arg1[%c0_3, %c256] : memref<2x1024xf32, #tpu.memory_space<vmem>>, vector<2x256xf32>
    %c0_4 = arith.constant 0 : index
    %c1 = arith.constant 1 : index
    %5 = memref.load %arg2[%c0_4, %c1] : memref<2x4xf32, #tpu.memory_space<smem>>
    %6 = vector.broadcast %5 : f32 to vector<2x256xf32>
    %7 = arith.mulf %4, %6 : vector<2x256xf32>
    %8 = arith.addf %3, %7 : vector<2x256xf32>
    %c0_5 = arith.constant 0 : index
    %c512 = arith.constant 512 : index
    %9 = vector.load %arg1[%c0_5, %c512] : memref<2x1024xf32, #tpu.memory_space<vmem>>, vector<2x256xf32>
    %c0_6 = arith.constant 0 : index
    %c2 = arith.constant 2 : index
    %10 = memref.load %arg2[%c0_6, %c2] : memref<2x4xf32, #tpu.memory_space<smem>>
    %11 = vector.broadcast %10 : f32 to vector<2x256xf32>
    %12 = arith.mulf %9, %11 : vector<2x256xf32>
    %13 = arith.addf %8, %12 : vector<2x256xf32>
    %c0_7 = arith.constant 0 : index
    %c768 = arith.constant 768 : index
    %14 = vector.load %arg1[%c0_7, %c768] : memref<2x1024xf32, #tpu.memory_space<vmem>>, vector<2x256xf32>
    %c0_8 = arith.constant 0 : index
    %c3 = arith.constant 3 : index
    %15 = memref.load %arg2[%c0_8, %c3] : memref<2x4xf32, #tpu.memory_space<smem>>
    %16 = vector.broadcast %15 : f32 to vector<2x256xf32>
    %17 = arith.mulf %14, %16 : vector<2x256xf32>
    %18 = arith.addf %13, %17 : vector<2x256xf32>
    %c0_9 = arith.constant 0 : index
    %19 = memref.load %arg3[%c0_9] : memref<2xf32, #tpu.memory_space<smem>>
    %20 = vector.broadcast %19 : f32 to vector<2x256xf32>
    %21 = arith.addf %18, %20 : vector<2x256xf32>
    %cst = arith.constant 0.000000e+00 : f32
    %22 = vector.broadcast %cst : f32 to vector<2x256xf32>
    %23 = arith.maximumf %21, %22 : vector<2x256xf32>
    %c0_10 = arith.constant 0 : index
    %c0_11 = arith.constant 0 : index
    %24 = vector.load %arg1[%c0_10, %c0_11] : memref<2x1024xf32, #tpu.memory_space<vmem>>, vector<2x256xf32>
    %c1_12 = arith.constant 1 : index
    %c0_13 = arith.constant 0 : index
    %25 = memref.load %arg2[%c1_12, %c0_13] : memref<2x4xf32, #tpu.memory_space<smem>>
    %26 = vector.broadcast %25 : f32 to vector<2x256xf32>
    %27 = arith.mulf %24, %26 : vector<2x256xf32>
    %c0_14 = arith.constant 0 : index
    %c256_15 = arith.constant 256 : index
    %28 = vector.load %arg1[%c0_14, %c256_15] : memref<2x1024xf32, #tpu.memory_space<vmem>>, vector<2x256xf32>
    %c1_16 = arith.constant 1 : index
    %c1_17 = arith.constant 1 : index
    %29 = memref.load %arg2[%c1_16, %c1_17] : memref<2x4xf32, #tpu.memory_space<smem>>
    %30 = vector.broadcast %29 : f32 to vector<2x256xf32>
    %31 = arith.mulf %28, %30 : vector<2x256xf32>
    %32 = arith.addf %27, %31 : vector<2x256xf32>
    %c0_18 = arith.constant 0 : index
    %c512_19 = arith.constant 512 : index
    %33 = vector.load %arg1[%c0_18, %c512_19] : memref<2x1024xf32, #tpu.memory_space<vmem>>, vector<2x256xf32>
    %c1_20 = arith.constant 1 : index
    %c2_21 = arith.constant 2 : index
    %34 = memref.load %arg2[%c1_20, %c2_21] : memref<2x4xf32, #tpu.memory_space<smem>>
    %35 = vector.broadcast %34 : f32 to vector<2x256xf32>
    %36 = arith.mulf %33, %35 : vector<2x256xf32>
    %37 = arith.addf %32, %36 : vector<2x256xf32>
    %c0_22 = arith.constant 0 : index
    %c768_23 = arith.constant 768 : index
    %38 = vector.load %arg1[%c0_22, %c768_23] : memref<2x1024xf32, #tpu.memory_space<vmem>>, vector<2x256xf32>
    %c1_24 = arith.constant 1 : index
    %c3_25 = arith.constant 3 : index
    %39 = memref.load %arg2[%c1_24, %c3_25] : memref<2x4xf32, #tpu.memory_space<smem>>
    %40 = vector.broadcast %39 : f32 to vector<2x256xf32>
    %41 = arith.mulf %38, %40 : vector<2x256xf32>
    %42 = arith.addf %37, %41 : vector<2x256xf32>
    %c1_26 = arith.constant 1 : index
    %43 = memref.load %arg3[%c1_26] : memref<2xf32, #tpu.memory_space<smem>>
    %44 = vector.broadcast %43 : f32 to vector<2x256xf32>
    %45 = arith.addf %42, %44 : vector<2x256xf32>
    %cst_27 = arith.constant 0.000000e+00 : f32
    %46 = vector.broadcast %cst_27 : f32 to vector<2x256xf32>
    %47 = arith.maximumf %45, %46 : vector<2x256xf32>
    %c0_28 = arith.constant 0 : index
    %c0_29 = arith.constant 0 : index
    %48 = vector.load %arg4[%c0_28, %c0_29] : memref<512x128xf32, #tpu.memory_space<vmem>>, vector<256x128xf32>
    %cst_30 = arith.constant dense<0.000000e+00> : vector<2x128xf32>
    %49 = tpu.matmul %23, %48, %cst_30 {dimension_numbers = #tpu.dot_dimension_numbers<[1], [0], [0], [1], [0, 0, 1, 1], [], []>} : vector<2x256xf32>, vector<256x128xf32>, vector<2x128xf32> -> vector<2x128xf32>
    %c256_31 = arith.constant 256 : index
    %c0_32 = arith.constant 0 : index
    %50 = vector.load %arg4[%c256_31, %c0_32] : memref<512x128xf32, #tpu.memory_space<vmem>>, vector<256x128xf32>
    %cst_33 = arith.constant dense<0.000000e+00> : vector<2x128xf32>
    %51 = tpu.matmul %47, %50, %cst_33 {dimension_numbers = #tpu.dot_dimension_numbers<[1], [0], [0], [1], [0, 0, 1, 1], [], []>} : vector<2x256xf32>, vector<256x128xf32>, vector<2x128xf32> -> vector<2x128xf32>
    %52 = arith.addf %49, %51 : vector<2x128xf32>
    %c0_34 = arith.constant 0 : index
    %c0_35 = arith.constant 0 : index
    %53 = vector.load %arg5[%c0_34, %c0_35] : memref<1x128xf32, #tpu.memory_space<vmem>>, vector<1x128xf32>
    %54 = vector.broadcast %53 : vector<1x128xf32> to vector<2x128xf32>
    %55 = arith.addf %52, %54 : vector<2x128xf32>
    %cst_36 = arith.constant dense<0xFF800000> : vector<2xf32>
    %56 = vector.multi_reduction <maximumf>, %55, %cst_36 [1] : vector<2x128xf32> to vector<2xf32>
    %57 = vector.shape_cast %56 : vector<2xf32> to vector<2x1xf32>
    %58 = vector.broadcast %57 : vector<2x1xf32> to vector<2x128xf32>
    %59 = arith.subf %55, %58 : vector<2x128xf32>
    %60 = math.exp %59 : vector<2x128xf32>
    %cst_37 = arith.constant dense<0.000000e+00> : vector<2xf32>
    %61 = vector.multi_reduction <add>, %60, %cst_37 [1] : vector<2x128xf32> to vector<2xf32>
    %62 = vector.shape_cast %61 : vector<2xf32> to vector<2x1xf32>
    %63 = tpu.reciprocal %62 {approx = true} : vector<2x1xf32> -> vector<2x1xf32>
    %64 = arith.mulf %62, %63 : vector<2x1xf32>
    %cst_38 = arith.constant 2.000000e+00 : f32
    %65 = vector.broadcast %cst_38 : f32 to vector<2x1xf32>
    %66 = arith.subf %65, %64 : vector<2x1xf32>
    %67 = arith.mulf %63, %66 : vector<2x1xf32>
    %68 = vector.broadcast %67 : vector<2x1xf32> to vector<2x128xf32>
    %69 = arith.mulf %60, %68 : vector<2x128xf32>
    %c0_39 = arith.constant 0 : index
    %c0_40 = arith.constant 0 : index
    %70 = vector.load %arg6[%c0_39, %c0_40] : memref<2x128xf32, #tpu.memory_space<vmem>>, vector<2x128xf32>
    tpu.vector_store %arg6[%c0_39, %c0_40], %69 {strides = array<i32>} : memref<2x128xf32, #tpu.memory_space<vmem>>, vector<2x128xf32>,
    return
  }
  func.func @transform_0(%arg0: i32) -> (i32, i32) {
    %c0_i32 = arith.constant 0 : i32
    %c0_i32_0 = arith.constant 0 : i32
    return %arg0, %c0_i32 : i32, i32
  }
  func.func @transform_1(%arg0: i32) -> (i32, i32) {
    %c0_i32 = arith.constant 0 : i32
    %c0_i32_0 = arith.constant 0 : i32
    %c0_i32_1 = arith.constant 0 : i32
    return %c0_i32, %c0_i32_0 : i32, i32
  }
  func.func @transform_2(%arg0: i32) -> i32 {
    %c0_i32 = arith.constant 0 : i32
    %c0_i32_0 = arith.constant 0 : i32
    return %c0_i32 : i32
  }
  func.func @transform_3(%arg0: i32) -> (i32, i32) {
    %c0_i32 = arith.constant 0 : i32
    %c0_i32_0 = arith.constant 0 : i32
    %c0_i32_1 = arith.constant 0 : i32
    return %c0_i32, %c0_i32_0 : i32, i32
  }
  func.func @transform_4(%arg0: i32) -> (i32, i32) {
    %c0_i32 = arith.constant 0 : i32
    %c0_i32_0 = arith.constant 0 : i32
    %c0_i32_1 = arith.constant 0 : i32
    return %c0_i32, %c0_i32_0 : i32, i32
  }
  func.func @transform_5(%arg0: i32) -> (i32, i32) {
    %c0_i32 = arith.constant 0 : i32
    %c0_i32_0 = arith.constant 0 : i32
    return %arg0, %c0_i32 : i32, i32
  }
}

</mosaic_0001>

<bundles_post_ra>
// kernel: tpu_custom_call.1
= control target key start
LH: loop header
LB: loop body
LE: loop exit
PB: predicated region body
PF: predicated region fallthrough
CT: control target
= control target key end

     0   :  { %10 = vsyncpa [#allocation3], 0  ;;  %s753_s0 = inlined_call_operand.hbm [shape: f32[2,1024], index: 0, kind: input, shape index: {}]   ;;  %s754_s1 = inlined_call_operand.vmem [shape: f32[2,4], index: 1, kind: input, shape index: {}]   ;;  %s755_s2 = inlined_call_operand.vmem [shape: f32[2], index: 2, kind: input, shape index: {}]   ;;  %s756_s3 = inlined_call_operand.hbm [shape: f32[512,128], index: 3, kind: input, shape index: {}]   ;;  %s757_s4 = inlined_call_operand.vmem [shape: f32[1,128], index: 4, kind: input, shape index: {}]   ;;  %s758_s5 = inlined_call_operand.hbm [shape: f32[2,128], index: 5, kind: output, shape index: {}]  }
   0x1   :  { %11 = vsyncpa [#allocation5], 0 }
   0x2   :  { %12 = vsyncpa [#allocation8], 0 }
   0x3   :  { %13 = vsyncpa [#allocation10], 0 }
   0x4   :  { %14 = vsyncpa [#allocation4], 0  ;;  %s31_s20 = sshll.u32 %s754_s1, 4  ;;  %s637_s21 = smov [#allocation2]   ;;  %s32_s20 = int_to_ptr.vmem [resolvable:$true] %s31_s20 }
   0x5   :  { %s21_s22 = sshll.u32 %s637_s21, 4  ;;  %s537_s25 = scalar_lea.hbm %s753_s0, 256  ;;  %s22_s22 = int_to_ptr.vmem [resolvable:$true] %s21_s22 }
   0x6   :  { %p538_p0 = scmp.ne.s32.totalorder %s753_s0, %s537_s25  ;;  %p541_p1 = scmp.lt.u32.totalorder %s537_s25, %s753_s0 }
   0x8   :  { %p543_p2 = pnand %p541_p1, %p538_p0 }
   0xa   :  { %546 = shalt.err (!%p543_p2)
}
   0xb   :  { %s547_s30 = scalar_lea.vmem %s22_s22, 256  ;;  %p552_p4 = scmp.lt.s32.totalorder %s22_s22, %s22_s22 }
   0xc   :  { %p548_p3 = scmp.ne.s32.totalorder %s22_s22, %s547_s30  ;;  %p553_p5 = scmp.lt.s32.totalorder %s547_s30, %s547_s30 }
   0xe   :  { %p554_p6 = por %p553_p5, %p552_p4 }
  0x10   :  { %p555_p7 = pnand %p554_p6, %p548_p3 }
  0x12   :  { %558 = shalt.err (!%p555_p7)
}
  0x13   :  { %24 = dma.hbm_to_vmem [thread:$0]  %s753_s0, 256, %s22_s22, [#allocation3]  }
  0x14   :  { %s559_s7 = scalar_lea.vmem %s32_s20, 32  ;;  %p564_p9 = scmp.lt.s32.totalorder %s32_s20, %s32_s20 }
  0x15   :  { %p560_p8 = scmp.ne.s32.totalorder %s32_s20, %s559_s7  ;;  %p565_p10 = scmp.lt.s32.totalorder %s559_s7, %s559_s7 }
  0x17   :  { %p566_p11 = por %p565_p10, %p564_p9 }
  0x19   :  { %p567_p12 = pnand %p566_p11, %p560_p8 }
  0x1b   :  { %570 = shalt.err (!%p567_p12)
}
  0x1c   :  { %s638_s8 = smov [#allocation6]   ;;  %s41_s11 = sshll.u32 %s755_s2, 4  ;;  %s42_s11 = int_to_ptr.vmem [resolvable:$true] %s41_s11 }
  0x1d   :  { %34 = dma.vmem_to_smem %s32_s20, 32, %s638_s8, [#allocation5]  }
  0x1e   :  { %s571_s12 = scalar_lea.vmem %s42_s11, 16  ;;  %p576_p0 = scmp.lt.s32.totalorder %s42_s11, %s42_s11 }
  0x1f   :  { %p572_p13 = scmp.ne.s32.totalorder %s42_s11, %s571_s12  ;;  %p577_p1 = scmp.lt.s32.totalorder %s571_s12, %s571_s12 }
  0x21   :  { %p578_p2 = por %p577_p1, %p576_p0 }
  0x23   :  { %p579_p3 = pnand %p578_p2, %p572_p13 }
  0x25   :  { %582 = shalt.err (!%p579_p3)
}
  0x26   :  { %s639_s0 = smov [#allocation7]   ;;  %s640_s13 = smov [#allocation9]  }
  0x27   :  { %44 = dma.vmem_to_smem %s42_s11, 16, %s639_s0, [#allocation8]  }
  0x28   :  { %s50_s14 = sshll.u32 %s640_s13, 4  ;;  %s583_s17 = scalar_lea.hbm %s756_s3, 8192  ;;  %s51_s14 = int_to_ptr.vmem [resolvable:$true] %s50_s14 }
  0x29   :  { %p584_p4 = scmp.ne.s32.totalorder %s756_s3, %s583_s17  ;;  %p587_p5 = scmp.lt.u32.totalorder %s583_s17, %s756_s3 }
  0x2b   :  { %p589_p6 = pnand %p587_p5, %p584_p4 }
  0x2d   :  { %592 = shalt.err (!%p589_p6)
}
  0x2e   :  { %s593_s21 = scalar_lea.vmem %s51_s14, 8192  ;;  %p598_p8 = scmp.lt.s32.totalorder %s51_s14, %s51_s14 }
  0x2f   :  { %p594_p7 = scmp.ne.s32.totalorder %s51_s14, %s593_s21  ;;  %p599_p9 = scmp.lt.s32.totalorder %s593_s21, %s593_s21 }
  0x31   :  { %p600_p10 = por %p599_p9, %p598_p8 }
  0x33   :  { %p601_p11 = pnand %p600_p10, %p594_p7 }
  0x35   :  { %604 = shalt.err (!%p601_p11)
}
  0x36   :  { %s641_s22 = smov 128   ;;  %s642_s23 = smov 8  }
  0x37   :  { %56 = dma.hbm_to_vmem [thread:$0]  %s756_s3, 8192, %s51_s14, [#allocation10], %s641_s22, %s641_s22, %s642_s23  }
  0x38   :  { %627 = dma.done.wait [#allocation3], 256  }
  0x39   :  { %628 = vsyncadd [#allocation3], 4294967040 }
  0x3a   :  { %629 = dma.done.wait [#allocation5], 32  }
  0x3b   :  { %630 = vsyncadd [#allocation5], 4294967264 }
  0x3c   :  { %631 = dma.done.wait [#allocation8], 16  }
  0x3d   :  { %632 = vsyncadd [#allocation8], 4294967280 }
  0x3e   :  { %633 = dma.done.wait [#allocation10], 8192  }
  0x3f   :  { %634 = vsyncadd [#allocation10], 4294959104 }
  0x40   :  { %71 = sfence }
  0x41   :  { %v162_v0 = vld [vmem:[#allocation9 + $0x180] sm:$0xff]  ;;  %v163_v1 = vld [vmem:[#allocation9 + $0x188] sm:$0xff]  ;;  %v164_v11 = vld [vmem:[#allocation9 + $0x190] sm:$0xff]  ;;  %s705_s3 = sld [smem:[#allocation6 + $0x80]]  ;;  %s707_s26 = sld [smem:[#allocation6 + $0x81]]  ;;  %vm348_vm0 = vcmask 1041408  }
  0x42   :  { %v130_v2 = vld [vmem:[#allocation9 + $0x80] sm:$0xff]  ;;  %v461_v3 = vpack.c.bf16 %v163_v1, %v162_v0  ;;  %v131_v4 = vld [vmem:[#allocation9 + $0x88] sm:$0xff]  ;;  %v165_v13 = vld [vmem:[#allocation9 + $0x198] sm:$0xff]  ;;  %s709_s27 = sld [smem:[#allocation6 + $0x82]]  ;;  %s711_s28 = sld [smem:[#allocation6 + $0x83]] }
  0x43   :  { %v146_v5 = vld [vmem:[#allocation9 + $0x100] sm:$0xff]  ;;  %v147_v6 = vld [vmem:[#allocation9 + $0x108] sm:$0xff]  ;;  %v493_v7 = vpack.c.bf16 %v131_v4, %v130_v2  ;;  %v132_v14 = vld [vmem:[#allocation9 + $0x90] sm:$0xff]  ;;  %v465_v16 = vpack.c.bf16 %v165_v13, %v164_v11  ;;  %s713_s29 = sld [smem:[#allocation6]]  ;;  %s715_s30 = sld [smem:[#allocation6 + $0x1]] }
  0x44   :  { %v463_v8 = vpack.c.bf16 %v147_v6, %v146_v5  ;;  %v114_v9 = vld [vmem:[#allocation9] sm:$0xff]  ;;  %v115_v10 = vld [vmem:[#allocation9 + $0x8] sm:$0xff]  ;;  %462 = vmatprep.subr.bf16.mxu0 %v461_v3  ;;  %v133_v15 = vld [vmem:[#allocation9 + $0x98] sm:$0xff]  ;;  %s717_s1 = sld [smem:[#allocation6 + $0x2]]  ;;  %s719_s6 = sld [smem:[#allocation6 + $0x3]] }
  0x45   :  { %v495_v12 = vpack.c.bf16 %v115_v10, %v114_v9  ;;  %494 = vmatprep.subr.bf16.mxu1 %v493_v7  ;;  %v497_v17 = vpack.c.bf16 %v133_v15, %v132_v14  ;;  %v148_v18 = vld [vmem:[#allocation9 + $0x110] sm:$0xff]  ;;  %v149_v19 = vld [vmem:[#allocation9 + $0x118] sm:$0xff]  ;;  %v166_v23 = vld [vmem:[#allocation9 + $0x1a0] sm:$0xff]  ;;  %s723_s7 = sld [smem:[#allocation7 + $0x1]]  ;;  %v643_v14 = vmov 1983009808  }
  0x46   :  { %464 = vmatpush3.bf16.msra.mxu0 %v463_v8  ;;  %v116_v20 = vld [vmem:[#allocation9 + $0x10] sm:$0xff]  ;;  %v467_v21 = vpack.c.bf16 %v149_v19, %v148_v18  ;;  %v117_v22 = vld [vmem:[#allocation9 + $0x18] sm:$0xff]  ;;  %v167_v24 = vld [vmem:[#allocation9 + $0x1a8] sm:$0xff]  ;;  %v182_v8 = vlaneseq  ;;  %v725_v15 = vunpack.c.l.s4 %v643_v14  ;;  %s731_s8 = sld [smem:[#allocation7]]  ;;  %s644_s11 = smov [#allocation11]  }
  0x47   :  { %496 = vmatpush3.bf16.msra.mxu1 %v495_v12  ;;  %466 = vmatprep.subr.bf16.mxu0 %v465_v16  ;;  %v499_v25 = vpack.c.bf16 %v117_v22, %v116_v20  ;;  %v469_v26 = vpack.c.bf16 %v167_v24, %v166_v23  ;;  %v134_v27 = vld [vmem:[#allocation9 + $0xa0] sm:$0xff]  ;;  %v135_v28 = vld [vmem:[#allocation9 + $0xa8] sm:$0xff]  ;;  %v168_v35 = vld [vmem:[#allocation9 + $0x1b0] sm:$0xff]  ;;  %v96_v12 = vstv %s705_s3  ;;  %v99_v13 = vstv %s707_s26  ;;  %s370_s12 = sshll.u32 %s644_s11, 4  ;;  %s371_s12 = int_to_ptr.vmem [resolvable:$true] %s370_s12 }
  0x48   :  { %498 = vmatprep.subr.bf16.mxu1 %v497_v17  ;;  %v150_v29 = vld [vmem:[#allocation9 + $0x120] sm:$0xff]  ;;  %v501_v30 = vpack.c.bf16 %v135_v28, %v134_v27  ;;  %v151_v31 = vld [vmem:[#allocation9 + $0x128] sm:$0xff]  ;;  %v169_v36 = vld [vmem:[#allocation9 + $0x1b8] sm:$0xff]  ;;  %p610_p13 = scmp.lt.s32.totalorder %s371_s12, %s371_s12 }
  0x49   :  { %v118_v32 = vld [vmem:[#allocation9 + $0x20] sm:$0xff]  ;;  %v119_v33 = vld [vmem:[#allocation9 + $0x28] sm:$0xff]  ;;  %v471_v34 = vpack.c.bf16 %v151_v31, %v150_v29  ;;  %v136_v37 = vld [vmem:[#allocation9 + $0xb0] sm:$0xff]  ;;  %v473_v39 = vpack.c.bf16 %v169_v36, %v168_v35  ;;  %v74_v16 = vstv %s713_s29  ;;  %v78_v22 = vstv %s715_s30 }
  0x4a   :  { %468 = vmatpush3.bf16.msra.mxu0 %v467_v21  ;;  %v503_v38 = vpack.c.bf16 %v119_v33, %v118_v32  ;;  %v137_v40 = vld [vmem:[#allocation9 + $0xb8] sm:$0xff]  ;;  %v152_v41 = vld [vmem:[#allocation9 + $0x130] sm:$0xff]  ;;  %v170_v46 = vld [vmem:[#allocation9 + $0x1c0] sm:$0xff]  ;;  %v103_v21 = vstv %s709_s27  ;;  %v83_v23 = vstv %s717_s1  ;;  %v107_v29 = vstv %s711_s28 }
  0x4b   :  { %500 = vmatpush3.bf16.msra.mxu1 %v499_v25  ;;  %470 = vmatprep.subr.bf16.mxu0 %v469_v26  ;;  %v153_v42 = vld [vmem:[#allocation9 + $0x138] sm:$0xff]  ;;  %v505_v43 = vpack.c.bf16 %v137_v40, %v136_v37  ;;  %v120_v44 = vld [vmem:[#allocation9 + $0x30] sm:$0xff]  ;;  %v171_v47 = vld [vmem:[#allocation9 + $0x1c8] sm:$0xff] }
  0x4c   :  { %502 = vmatprep.subr.bf16.mxu1 %v501_v30  ;;  %v121_v45 = vld [vmem:[#allocation9 + $0x38] sm:$0xff]  ;;  %v138_v48 = vld [vmem:[#allocation9 + $0xc0] sm:$0xff]  ;;  %v139_v49 = vld [vmem:[#allocation9 + $0xc8] sm:$0xff]  ;;  %v475_v50 = vpack.c.bf16 %v153_v42, %v152_v41  ;;  %v477_v52 = vpack.c.bf16 %v171_v47, %v170_v46  ;;  %v88_v30 = vstv %s719_s6 }
  0x4d   :  { %v507_v51 = vpack.c.bf16 %v121_v45, %v120_v44  ;;  %v154_v53 = vld [vmem:[#allocation9 + $0x140] sm:$0xff]  ;;  %v155_v54 = vld [vmem:[#allocation9 + $0x148] sm:$0xff]  ;;  %v509_v56 = vpack.c.bf16 %v139_v49, %v138_v48  ;;  %v172_v58 = vld [vmem:[#allocation9 + $0x1d0] sm:$0xff] }
  0x4e   :  { %472 = vmatpush3.bf16.msra.mxu0 %v471_v34  ;;  %v122_v55 = vld [vmem:[#allocation9 + $0x40] sm:$0xff]  ;;  %v123_v57 = vld [vmem:[#allocation9 + $0x48] sm:$0xff]  ;;  %v173_v59 = vld [vmem:[#allocation9 + $0x1d8] sm:$0xff]  ;;  %v479_v62 = vpack.c.bf16 %v155_v54, %v154_v53 }
  0x4f   :  { %504 = vmatpush3.bf16.msra.mxu1 %v503_v38  ;;  %474 = vmatprep.subr.bf16.mxu0 %v473_v39  ;;  %v140_v60 = vld [vmem:[#allocation9 + $0xd0] sm:$0xff]  ;;  %v141_v61 = vld [vmem:[#allocation9 + $0xd8] sm:$0xff]  ;;  %v511_v63 = vpack.c.bf16 %v123_v57, %v122_v55  ;;  %v481_v0 = vpack.c.bf16 %v173_v59, %v172_v58  ;;  %v174_v6 = vld [vmem:[#allocation9 + $0x1e0] sm:$0xff]  ;;  %v183_v57 = vshrl.u32 %v182_v8, 7  ;;  %v111_v58 = vstv %s723_s7 }
  0x50   :  { %506 = vmatprep.subr.bf16.mxu1 %v505_v43  ;;  %v156_v1 = vld [vmem:[#allocation9 + $0x150] sm:$0xff]  ;;  %v157_v2 = vld [vmem:[#allocation9 + $0x158] sm:$0xff]  ;;  %v513_v4 = vpack.c.bf16 %v141_v61, %v140_v60  ;;  %v175_v7 = vld [vmem:[#allocation9 + $0x1e8] sm:$0xff] }
  0x51   :  { %v124_v3 = vld [vmem:[#allocation9 + $0x50] sm:$0xff]  ;;  %v125_v5 = vld [vmem:[#allocation9 + $0x58] sm:$0xff]  ;;  %v142_v9 = vld [vmem:[#allocation9 + $0xe0] sm:$0xff]  ;;  %v483_v17 = vpack.c.bf16 %v157_v2, %v156_v1  ;;  %v485_v25 = vpack.c.bf16 %v175_v7, %v174_v6 }
  0x52   :  { %476 = vmatpush3.bf16.msra.mxu0 %v475_v50  ;;  %v143_v10 = vld [vmem:[#allocation9 + $0xe8] sm:$0xff]  ;;  %v158_v11 = vld [vmem:[#allocation9 + $0x160] sm:$0xff]  ;;  %v515_v24 = vpack.c.bf16 %v125_v5, %v124_v3  ;;  %v176_v26 = vld [vmem:[#allocation9 + $0x1f0] sm:$0xff] }
  0x53   :  { %508 = vmatpush3.bf16.msra.mxu1 %v507_v51  ;;  %478 = vmatprep.subr.bf16.mxu0 %v477_v52  ;;  %v159_v18 = vld [vmem:[#allocation9 + $0x168] sm:$0xff]  ;;  %v126_v19 = vld [vmem:[#allocation9 + $0x60] sm:$0xff]  ;;  %v72_v27 = vld [vmem:[#allocation2] sm:$0xf]  ;;  %v517_v31 = vpack.c.bf16 %v143_v10, %v142_v9 }
  0x54   :  { %510 = vmatprep.subr.bf16.mxu1 %v509_v56  ;;  %v127_v20 = vld [vmem:[#allocation9 + $0x68] sm:$0xff]  ;;  %v76_v28 = vld [vmem:[#allocation2 + $0x4] sm:$0xf]  ;;  %v177_v32 = vld [vmem:[#allocation9 + $0x1f8] sm:$0xff]  ;;  %v97_v35 = vmul.f32 %v96_v12, %v72_v27  ;;  %v75_v37 = vmul.f32 %v74_v16, %v72_v27  ;;  %v487_v43 = vpack.c.bf16 %v159_v18, %v158_v11  ;;  %v181_v56 = vunpack.c.0.s8 %v725_v15 }
  0x55   :  { %v81_v33 = vld [vmem:[#allocation2 + $0x8] sm:$0xf]  ;;  %v86_v34 = vld [vmem:[#allocation2 + $0xc] sm:$0xf]  ;;  %v100_v36 = vmul.f32 %v99_v13, %v76_v28  ;;  %v144_v38 = vld [vmem:[#allocation9 + $0xf0] sm:$0xff]  ;;  %v79_v41 = vmul.f32 %v78_v22, %v76_v28  ;;  %v519_v44 = vpack.c.bf16 %v127_v20, %v126_v19  ;;  %v489_v47 = vpack.c.bf16 %v177_v32, %v176_v26 }
  0x56   :  { %480 = vmatpush3.bf16.msra.mxu0 %v479_v62  ;;  %v145_v39 = vld [vmem:[#allocation9 + $0xf8] sm:$0xff]  ;;  %v104_v40 = vmul.f32 %v103_v21, %v81_v33  ;;  %v84_v42 = vmul.f32 %v83_v23, %v81_v33  ;;  %v108_v46 = vmul.f32 %v107_v29, %v86_v34  ;;  %v160_v48 = vld [vmem:[#allocation9 + $0x170] sm:$0xff]  ;;  %v89_v51 = vmul.f32 %v88_v30, %v86_v34 }
  0x57   :  { %512 = vmatpush3.bf16.msra.mxu1 %v511_v63  ;;  %482 = vmatprep.subr.bf16.mxu0 %v481_v0  ;;  %v101_v45 = vadd.f32 %v100_v36, %v97_v35  ;;  %v161_v49 = vld [vmem:[#allocation9 + $0x178] sm:$0xff]  ;;  %v80_v50 = vadd.f32 %v79_v41, %v75_v37  ;;  %v521_v52 = vpack.c.bf16 %v145_v39, %v144_v38  ;;  %v128_v53 = vld [vmem:[#allocation9 + $0x70] sm:$0xff]  ;;  %v92_v62 = vstv %s731_s8 }
  0x58   :  { %514 = vmatprep.subr.bf16.mxu1 %v513_v4  ;;  %v129_v54 = vld [vmem:[#allocation9 + $0x78] sm:$0xff]  ;;  %v491_v60 = vpack.c.bf16 %v161_v49, %v160_v48  ;;  %v184_v2 = vsub.s32 %v181_v56, %v183_v57  ;;  %v390_v16 = vld [vmem:[%s757_s4] ss:$0 sm:$0xff]  ;;  %s605_s4 = scalar_lea.vmem %s371_s12, 32 }
  0x59   :  { %v105_v55 = vadd.f32 %v104_v40, %v101_v45  ;;  %v85_v59 = vadd.f32 %v84_v42, %v80_v50  ;;  %v523_v63 = vpack.c.bf16 %v129_v54, %v128_v53  ;;  %p606_p12 = scmp.ne.s32.totalorder %s371_s12, %s605_s4  ;;  %p611_p0 = scmp.lt.s32.totalorder %s605_s4, %s605_s4 }
  0x5a   :  { %484 = vmatpush3.bf16.msra.mxu0 %v483_v17 }
  0x5b   :  { %516 = vmatpush3.bf16.msra.mxu1 %v515_v24  ;;  %486 = vmatprep.subr.bf16.mxu0 %v485_v25  ;;  %v109_v61 = vadd.f32 %v108_v46, %v105_v55  ;;  %v90_v0 = vadd.f32 %v89_v51, %v85_v59  ;;  %p612_p1 = por %p611_p0, %p610_p13 }
  0x5c   :  { %518 = vmatprep.subr.bf16.mxu1 %v517_v31 }
  0x5d   :  { %v112_v1 = vadd.f32 %v111_v58, %v109_v61  ;;  %v93_v3 = vadd.f32 %v92_v62, %v90_v0  ;;  %p613_p2 = pnand %p612_p1, %p606_p12 }
  0x5e   :  { %488 = vmatpush3.bf16.msra.mxu0 %v487_v43 }
  0x5f   :  { %520 = vmatpush3.bf16.msra.mxu1 %v519_v44  ;;  %490 = vmatprep.subr.bf16.mxu0 %v489_v47  ;;  %v113_v4 = vmax.f32 %v112_v1, 0.0  ;;  %v94_v5 = vmax.f32 %v93_v3, 0.0 }
  0x60   :  { %522 = vmatprep.subr.bf16.mxu1 %v521_v52 }
  0x61   :  { %v185_v6 = vrot.slane %v113_v4, %v184_v2  ;;  %v266_v7 = vrot.slane %v94_v5, %v184_v2 }
  0x62   :  { %492 = vmatpush3.bf16.msra.mxu0 %v491_v60 }
  0x63   :  { %524 = vmatpush3.bf16.msra.mxu1 %v523_v63  ;;  %v186_v8 = vcombine.high %v185_v6, %v185_v6  ;;  %v267_v9 = vcombine.high %v266_v7, %v266_v7 }
  0x65   :  { %253 = vmatprep.mubr.f32.mxu0 %v186_v8  ;;  %334 = vmatprep.mubr.f32.mxu1 %v267_v9 }
  0x66   :  { %254 = vmatmul.mubr.f32.vlgmr.msra.gmra.mrb[0].mxu0 %v185_v6  ;;  %335 = vmatmul.mubr.f32.vlgmr.msra.gmra.mrb[0].mxu1 %v266_v7 }
 0x139   :  { %v423_v10 = vpop.f32.mrb[0].mxu0  ;;  %v458_v11 = vpop.f32.mrb[0].mxu1 }
 0x13a   :  { %v424_v12 = vpop.f32.mrb[1].mxu0  ;;  %v459_v14 = vpop.f32.mrb[1].mxu1 }
 0x13b   :  { %v425_v13 = vadd.f32 %v424_v12, %v423_v10  ;;  %v460_v15 = vadd.f32 %v459_v14, %v458_v11 }
 0x13d   :  { %v337_v17 = vadd.f32 %v460_v15, %v425_v13 }
 0x13f   :  { %v347_v18 = vadd.f32 %v390_v16, %v337_v17 }
 0x141   :  { %v349_v19 = vsel %vm348_vm0, %v347_v18, -inf }
 0x142   :  { %350 = vmax.xlane.f32.xlu0 %v349_v19 }
 0x1cf   :  { %v351_v20 = vpop.xlane.xlu0 %350 }
 0x1d0   :  { %v352_v21 = vsub.f32 %v347_v18, %v351_v20 }
 0x1d2   :  { %v353_v22 = vmul.f32 1.442695, %v352_v21 }
 0x1d4   :  { %533 = vpow2.f32 %v353_v22 }
 0x1de   :  { %v534_v23 = vpop.eup %533 }
 0x1df   :  { %v355_v24 = vsel %vm348_vm0, %v534_v23, 0.0 }
 0x1e0   :  { %356 = vadd.xlane.f32.xlu0 %v355_v24 }
 0x26d   :  { %v357_v25 = vpop.xlane.xlu0 %356 }
 0x26e   :  { %535 = vrcp.f32 %v357_v25 }
 0x278   :  { %v536_v26 = vpop.eup %535 }
 0x279   :  { %v359_v27 = vmul.f32 %v536_v26, %v357_v25 }
 0x27b   :  { %v360_v28 = vsub.f32 2.0, %v359_v27 }
 0x27d   :  { %v361_v29 = vmul.f32 %v536_v26, %v360_v28 }
 0x27f   :  { %v362_v30 = vmul.f32 %v534_v23, %v361_v29 }
 0x281   :  { %363 = vst [vmem:[#allocation11] sm:$0x3] %v362_v30 }
 0x282   :  { %616 = shalt.err (!%p613_p2)
}
 0x283   :  { %s617_s14 = scalar_lea.hbm %s758_s5, 32 }
 0x284   :  { %p618_p3 = scmp.ne.s32.totalorder %s758_s5, %s617_s14  ;;  %p621_p4 = scmp.lt.u32.totalorder %s617_s14, %s758_s5 }
 0x286   :  { %p623_p5 = pnand %p621_p4, %p618_p3 }
 0x288   :  { %626 = shalt.err (!%p623_p5)
}
 0x289   :  { %373 = dma.vmem_to_hbm [thread:$0]  %s371_s12, 32, %s758_s5, [#allocation4]  }
 0x28a   :  { %635 = dma.done.wait [#allocation4], 32  }
 0x28b   :  { %636 = vsyncadd [#allocation4], 4294967264 }
 0x28c   :  { %377 = vsyncpa [#allocation3], 1 }
 0x28d   :  { %378 = vsyncpa [#allocation10], 1 }
 0x28e   :  { %379 = vsyncpa [#allocation4], 1 }
 0x28f   :  { %380 = vsyncpa [#allocation5], 1 }
 0x290   :  { %381 = vsyncpa [#allocation8], 1 }

</bundles_post_ra>
